<compile_context>
chip_gen: v6e
topology: v6e:2x2x1
jax: 0.10.0
libtpu: 0.0.40
codegen_flags: <defaults>
</compile_context>

<pallas_src>
import functools

import jax
import jax.numpy as jnp
from jax.experimental import pallas as pl
from jax.experimental.pallas import tpu as pltpu

LANE = 128                     # vreg lane width (last dim)
BLOCK_ROWS = 8192              # 8192 x 128 f32 = 4 MiB per block
MIN_BLOCK_ROWS = 256           # 128 KiB f32 floor; keeps medium tensors pipelined
SUBLANE_MULT = 32              # covers f32 (8) / bf16 (16) / int8-fp8 (32) packing
TINY_BYPASS_ELEMS = 64 * 1024  # below this, a pallas_call costs more than it saves
VMEM_LIMIT_BYTES = 48 * 1024 * 1024  # <= v7x 64 MiB physical, leaves ~16 MiB headroom


def _round_up(x, m):
    return ((x + m - 1) // m) * m


def _device_kind():
    try:
        return jax.devices()[0].device_kind.lower()
    except Exception:
        return ""


def _dim_semantics():
    # v7x has 2 TensorCores/chip; only CORE_PARALLEL actually shards the grid
    # across them.  Single-TC chips (v5e/v6e) keep the plain "parallel" hint.
    kind = _device_kind()
    if "v7" in kind and hasattr(pltpu, "CORE_PARALLEL"):
        return (pltpu.CORE_PARALLEL,)
    return ("parallel",)


def _compute_dtype(x_dtype):
    # Native bf16 compute only where the VPU/EUP support it (v6e / v7x).
    if x_dtype == jnp.bfloat16:
        kind = _device_kind()
        if ("v6" in kind) or ("v7" in kind):
            return jnp.bfloat16
    return jnp.float32


def _swish_kernel(b_ref, x_ref, o_ref, *, compute_dtype):
    # b_ref: SMEM scalar (shape (1,)); x_ref/o_ref: (block_rows, LANE) VMEM tiles
    b = b_ref[0].astype(compute_dtype)
    x = x_ref[...].astype(compute_dtype)
    y = x * jax.nn.sigmoid(b * x)          # sigmoid -> EUP, muls -> VPU (huge slack)
    o_ref[...] = y.astype(o_ref.dtype)


def _swish_pallas_2d(x2, b_f32, out_dtype):
    """Run the streaming kernel over a lane-dense (rows, 128) array."""
    rows = x2.shape[0]
    # Shrink the block for small/medium tensors so the grid keeps >= ~8 steps
    # (software pipelining), but never below 256 rows / 32-sublane alignment.
    block_rows = min(
        BLOCK_ROWS,
        max(MIN_BLOCK_ROWS, _round_up(pl.cdiv(rows, 8), SUBLANE_MULT)),
    )
    grid = (pl.cdiv(rows, block_rows),)    # last block may be partial (Pallas masks it)

    kernel = functools.partial(_swish_kernel, compute_dtype=_compute_dtype(out_dtype))
    return pl.pallas_call(
        kernel,
        out_shape=jax.ShapeDtypeStruct((rows, LANE), out_dtype),
        grid=grid,
        in_specs=[
            pl.BlockSpec(memory_space=pltpu.SMEM),               # b: whole (1,) in SMEM
            pl.BlockSpec((block_rows, LANE), lambda i: (i, 0)),  # x block
        ],
        out_specs=pl.BlockSpec((block_rows, LANE), lambda i: (i, 0)),
        compiler_params=pltpu.CompilerParams(
            dimension_semantics=_dim_semantics(),
            vmem_limit_bytes=VMEM_LIMIT_BYTES,
        ),
    )(b_f32, x2)


def swish(x, b, *, min_pallas_elems=TINY_BYPASS_ELEMS):
    """Elementwise Swish (x * sigmoid(b * x)) via a Pallas TPU kernel.

    x: any-shape array (e.g. NCHW); b: shape-(1,) learnable scalar parameter.
    min_pallas_elems: tensors smaller than this use a plain-JAX fallback
    (set to 0 to force the Pallas path, e.g. for testing).
    """
    orig_shape = x.shape
    orig_dtype = x.dtype
    n = x.size
    b32 = jnp.asarray(b, jnp.float32).reshape(1)

    def ref_swish(v):
        vf = v.astype(jnp.float32)
        return (vf * jax.nn.sigmoid(b32[0] * vf)).astype(orig_dtype)

    # Tiny-tensor bypass: custom-call + per-step overhead dominates at this size;
    # XLA fuses the elementwise op into neighbors for free.
    if n < max(min_pallas_elems, LANE):
        return ref_swish(x)

    flat = x.reshape(-1)

    if n % LANE == 0:
        # Fast path (typical NCHW sizes): no padding / extra copies at all.
        x2 = flat.reshape(n // LANE, LANE)
        out = _swish_pallas_2d(x2, b32, orig_dtype)
        return out.reshape(orig_shape)

    # Ragged tail: kernel on the lane-aligned prefix, plain JAX on the <128-elem
    # tail.  Avoids the full-tensor pad + slice round-trip (2 extra HBM passes).
    n_main = n - (n % LANE)
    main2 = flat[:n_main].reshape(n_main // LANE, LANE)
    out_main = _swish_pallas_2d(main2, b32, orig_dtype).reshape(-1)
    tail_out = ref_swish(flat[n_main:])
    return jnp.concatenate([out_main, tail_out]).reshape(orig_shape)


if __name__ == "__main__":
    key = jax.random.PRNGKey(0)
    # NCHW input, small shape (numel = 2048, divisible by 128 -> aligned fast path)
    x = jax.random.normal(key, (2, 4, 16, 16), dtype=jnp.float32)
    # Parameter b initialized deterministically to ones(1), as in the module
    b = jnp.ones((1,), dtype=jnp.float32)

    # Force the Pallas path at this small demo shape (production default would
    # use the tiny-tensor bypass here).
    y = jax.block_until_ready(swish(x, b, min_pallas_elems=0))
    y_ref = x * jax.nn.sigmoid(b[0] * x)
    assert y.shape == x.shape and y.dtype == x.dtype
    assert jnp.allclose(y, y_ref, atol=1e-5, rtol=1e-5)

    # Non-multiple-of-128 path: kernel on aligned prefix + plain-JAX tail.
    x_odd = jax.random.normal(key, (3, 5, 37), dtype=jnp.float32)  # 555 elems
    y_odd = jax.block_until_ready(swish(x_odd, b, min_pallas_elems=0))
    assert jnp.allclose(y_odd, x_odd * jax.nn.sigmoid(b[0] * x_odd), atol=1e-5, rtol=1e-5)

    # Default tiny-tensor bypass (plain-JAX path) still matches.
    y_tiny = jax.block_until_ready(swish(x, b))
    assert jnp.allclose(y_tiny, y_ref, atol=1e-5, rtol=1e-5)

    print("KERNEL_OK")
</pallas_src>

<mosaic_0001>
module attributes {stable_mosaic.version = 11 : i64} {
  func.func @_swish_kernel(%arg0: i32, %arg1: memref<1xf32, #tpu.memory_space<smem>>, %arg2: memref<256x128xf32, #tpu.memory_space<vmem>>, %arg3: memref<256x128xf32, #tpu.memory_space<vmem>>) attributes {dimension_semantics = [#tpu.dimension_semantics<parallel>], iteration_bounds = array<i64: 1>, scalar_prefetch = 0 : i64, scratch_operands = 0 : i64, tpu.core_type = #tpu.core_type<tc>, window_params = [{transform_indices = @transform_0, window_bounds = array<i64: 1>}, {transform_indices = @transform_1, window_bounds = array<i64: 256, 128>}, {transform_indices = @transform_2, window_bounds = array<i64: 256, 128>}]} {
    %c0 = arith.constant 0 : index
    %0 = memref.load %arg1[%c0] : memref<1xf32, #tpu.memory_space<smem>>
    %c0_0 = arith.constant 0 : index
    %c0_1 = arith.constant 0 : index
    %1 = vector.load %arg2[%c0_0, %c0_1] : memref<256x128xf32, #tpu.memory_space<vmem>>, vector<256x128xf32>
    %2 = vector.broadcast %0 : f32 to vector<256x128xf32>
    %3 = arith.mulf %2, %1 : vector<256x128xf32>
    %4 = arith.negf %3 : vector<256x128xf32>
    %5 = math.exp %4 : vector<256x128xf32>
    %cst = arith.constant 1.000000e+00 : f32
    %6 = vector.broadcast %cst : f32 to vector<256x128xf32>
    %7 = arith.addf %6, %5 : vector<256x128xf32>
    %8 = arith.divf %6, %7 : vector<256x128xf32>
    %9 = arith.mulf %1, %8 : vector<256x128xf32>
    %c0_2 = arith.constant 0 : index
    %c0_3 = arith.constant 0 : index
    %10 = vector.load %arg3[%c0_2, %c0_3] : memref<256x128xf32, #tpu.memory_space<vmem>>, vector<256x128xf32>
    tpu.vector_store %arg3[%c0_2, %c0_3], %9 {strides = array<i32>} : memref<256x128xf32, #tpu.memory_space<vmem>>, vector<256x128xf32>,
    return
  }
  func.func @transform_0(%arg0: i32) -> i32 {
    %c0_i32 = arith.constant 0 : i32
    %c0_i32_0 = arith.constant 0 : i32
    return %c0_i32 : i32
  }
  func.func @transform_1(%arg0: i32) -> (i32, i32) {
    %c0_i32 = arith.constant 0 : i32
    %c0_i32_0 = arith.constant 0 : i32
    return %arg0, %c0_i32 : i32, i32
  }
  func.func @transform_2(%arg0: i32) -> (i32, i32) {
    %c0_i32 = arith.constant 0 : i32
    %c0_i32_0 = arith.constant 0 : i32
    return %arg0, %c0_i32 : i32, i32
  }
}

</mosaic_0001>

<bundles_post_ra>
// kernel: tpu_custom_call.1
= control target key start
LH: loop header
LB: loop body
LE: loop exit
PB: predicated region body
PF: predicated region fallthrough
CT: control target
= control target key end

     0   :  { %8 = vsyncpa [#allocation4], 0  ;;  %s770_s0 = inlined_call_operand.<no memory space> [shape: f32[1], index: 0, kind: input, shape index: {}]   ;;  %s771_s1 = inlined_call_operand.hbm [shape: f32[16,128], index: 1, kind: input, shape index: {}]   ;;  %s772_s2 = inlined_call_operand.hbm [shape: f32[16,128], index: 2, kind: output, shape index: {}]  }
   0x1   :  { %9 = vsyncpa [#allocation5], 0 }
   0x2   :  { %16 = vsyncadd [#allocation4], 3840  ;;  %s574_s9 = smov [#allocation3]  }
   0x3   :  { %s17_s10 = sshll.u32 %s574_s9, 4  ;;  %s18_s10 = int_to_ptr.vmem [resolvable:$true] %s17_s10 }
   0x4   :  { %s538_s11 = scalar_lea.vmem %s18_s10, 256  ;;  %s542_s12 = scalar_lea.vmem %s18_s10, 4096 }
   0x5   :  { %p539_p0 = scmp.ne.s32.totalorder %s18_s10, %s538_s11  ;;  %p543_p1 = scmp.lt.s32.totalorder %s18_s10, %s18_s10 }
   0x6   :  { %p544_p2 = scmp.lt.s32.totalorder %s542_s12, %s538_s11 }
   0x8   :  { %p545_p3 = por %p544_p2, %p543_p1 }
   0xa   :  { %p546_p4 = pnand %p545_p3, %p539_p0 }
   0xc   :  { %549 = shalt.err (!%p546_p4)
}
   0xd   :  { %s575_s13 = smov 128   ;;  %s576_s14 = smov 8  }
   0xe   :  { %23 = dma.hbm_to_vmem [thread:$0]  %s771_s1, 256, %s18_s10, [#allocation4], %s575_s13, %s575_s13, %s576_s14  }
   0xf   :  { %570 = dma.done.wait [#allocation4], 4096  }
  0x10   :  { %571 = vsyncadd [#allocation4], 4294963200  ;;  %v602_v0 = vstv %s770_s0  ;;  %v604_v1 = vld [vmem:[#allocation3] sm:$0xff]  ;;  %v606_v2 = vld [vmem:[#allocation3 + $0x8] sm:$0xff] }
  0x11   :  { %v608_v3 = vld [vmem:[#allocation3 + $0x10] sm:$0xff]  ;;  %v61_v4 = vmul.f32 %v602_v0, %v604_v1  ;;  %v62_v5 = vmul.f32 %v602_v0, %v606_v2  ;;  %v616_v7 = vld [vmem:[#allocation3 + $0x18] sm:$0xff]  ;;  %v618_v8 = vld [vmem:[#allocation3 + $0x20] sm:$0xff] }
  0x12   :  { %v63_v6 = vmul.f32 %v602_v0, %v608_v3  ;;  %v620_v9 = vld [vmem:[#allocation3 + $0x28] sm:$0xff]  ;;  %v64_v10 = vmul.f32 %v602_v0, %v616_v7  ;;  %v65_v11 = vmul.f32 %v602_v0, %v618_v8  ;;  %v628_v13 = vld [vmem:[#allocation3 + $0x30] sm:$0xff]  ;;  %v630_v14 = vld [vmem:[#allocation3 + $0x38] sm:$0xff] }
  0x13   :  { %v66_v12 = vmul.f32 %v602_v0, %v620_v9  ;;  %v632_v15 = vld [vmem:[#allocation3 + $0x40] sm:$0xff]  ;;  %v366_v16 = vmul.f32 -1.442695, %v61_v4  ;;  %v367_v17 = vmul.f32 -1.442695, %v62_v5  ;;  %v67_v19 = vmul.f32 %v602_v0, %v628_v13  ;;  %v640_v24 = vld [vmem:[#allocation3 + $0x48] sm:$0xff] }
  0x14   :  { %v368_v18 = vmul.f32 -1.442695, %v63_v6  ;;  %v369_v20 = vmul.f32 -1.442695, %v64_v10  ;;  %v68_v21 = vmul.f32 %v602_v0, %v630_v14  ;;  %v370_v22 = vmul.f32 -1.442695, %v65_v11 }
  0x15   :  { %402 = vpow2.f32 %v366_v16  ;;  %v69_v23 = vmul.f32 %v602_v0, %v632_v15  ;;  %v642_v25 = vld [vmem:[#allocation3 + $0x50] sm:$0xff]  ;;  %v644_v26 = vld [vmem:[#allocation3 + $0x58] sm:$0xff]  ;;  %v371_v27 = vmul.f32 -1.442695, %v66_v12  ;;  %v70_v28 = vmul.f32 %v602_v0, %v640_v24  ;;  %v648_v29 = vld [vmem:[#allocation3 + $0x60] sm:$0xff] }
  0x16   :  { %404 = vpow2.f32 %v367_v17  ;;  %v372_v30 = vmul.f32 -1.442695, %v67_v19  ;;  %v71_v31 = vmul.f32 %v602_v0, %v642_v25  ;;  %v652_v32 = vld [vmem:[#allocation3 + $0x68] sm:$0xff]  ;;  %v373_v33 = vmul.f32 -1.442695, %v68_v21  ;;  %v656_v35 = vld [vmem:[#allocation3 + $0x70] sm:$0xff] }
  0x17   :  { %406 = vpow2.f32 %v368_v18  ;;  %v72_v34 = vmul.f32 %v602_v0, %v644_v26  ;;  %v374_v36 = vmul.f32 -1.442695, %v69_v23  ;;  %v73_v37 = vmul.f32 %v602_v0, %v648_v29  ;;  %v660_v38 = vld [vmem:[#allocation3 + $0x78] sm:$0xff]  ;;  %v668_v6 = vld [vmem:[#allocation3 + $0x80] sm:$0xff]  ;;  %v670_v12 = vld [vmem:[#allocation3 + $0x88] sm:$0xff] }
  0x18   :  { %408 = vpow2.f32 %v369_v20  ;;  %v375_v39 = vmul.f32 -1.442695, %v70_v28  ;;  %v74_v40 = vmul.f32 %v602_v0, %v652_v32  ;;  %v376_v41 = vmul.f32 -1.442695, %v71_v31  ;;  %v672_v18 = vld [vmem:[#allocation3 + $0x90] sm:$0xff] }
  0x19   :  { %410 = vpow2.f32 %v370_v22  ;;  %v75_v42 = vmul.f32 %v602_v0, %v656_v35  ;;  %v377_v43 = vmul.f32 -1.442695, %v72_v34  ;;  %v76_v44 = vmul.f32 %v602_v0, %v660_v38  ;;  %v676_v22 = vld [vmem:[#allocation3 + $0x98] sm:$0xff] }
  0x1a   :  { %412 = vpow2.f32 %v371_v27  ;;  %v378_v45 = vmul.f32 -1.442695, %v73_v37  ;;  %v379_v46 = vmul.f32 -1.442695, %v74_v40  ;;  %v77_v21 = vmul.f32 %v602_v0, %v668_v6 }
  0x1b   :  { %414 = vpow2.f32 %v372_v30  ;;  %v380_v47 = vmul.f32 -1.442695, %v75_v42  ;;  %v381_v48 = vmul.f32 -1.442695, %v76_v44  ;;  %v78_v28 = vmul.f32 %v602_v0, %v670_v12  ;;  %v680_v30 = vld [vmem:[#allocation3 + $0xa0] sm:$0xff] }
  0x1c   :  { %416 = vpow2.f32 %v373_v33  ;;  %v79_v34 = vmul.f32 %v602_v0, %v672_v18  ;;  %v80_v40 = vmul.f32 %v602_v0, %v676_v22  ;;  %v382_v44 = vmul.f32 -1.442695, %v77_v21 }
  0x1d   :  { %418 = vpow2.f32 %v374_v36  ;;  %v684_v36 = vld [vmem:[#allocation3 + $0xa8] sm:$0xff] }
  0x1e   :  { %420 = vpow2.f32 %v375_v39 }
  0x1f   :  { %422 = vpow2.f32 %v376_v41  ;;  %v688_v41 = vld [vmem:[#allocation3 + $0xb0] sm:$0xff] }
  0x20   :  { %424 = vpow2.f32 %v377_v43 }
  0x21   :  { %426 = vpow2.f32 %v378_v45  ;;  %v81_v45 = vmul.f32 %v602_v0, %v680_v30 }
  0x22   :  { %v403_v49 = vpop.eup %402  ;;  %428 = vpow2.f32 %v379_v46  ;;  %v692_v46 = vld [vmem:[#allocation3 + $0xb8] sm:$0xff] }
  0x23   :  { %v405_v50 = vpop.eup %404  ;;  %v189_v51 = vadd.f32 1.0, %v403_v49  ;;  %430 = vpow2.f32 %v380_v47  ;;  %v383_v49 = vmul.f32 -1.442695, %v78_v28 }
  0x24   :  { %v407_v52 = vpop.eup %406  ;;  %v190_v53 = vadd.f32 1.0, %v405_v50  ;;  %432 = vpow2.f32 %v381_v48  ;;  %v82_v50 = vmul.f32 %v602_v0, %v684_v36 }
  0x25   :  { %v409_v54 = vpop.eup %408  ;;  %434 = vrcp.f32 %v189_v51  ;;  %v191_v55 = vadd.f32 1.0, %v407_v52  ;;  %v696_v51 = vld [vmem:[#allocation3 + $0xc0] sm:$0xff] }
  0x26   :  { %v411_v56 = vpop.eup %410  ;;  %436 = vrcp.f32 %v190_v53  ;;  %v192_v57 = vadd.f32 1.0, %v409_v54  ;;  %v384_v54 = vmul.f32 -1.442695, %v79_v34 }
  0x27   :  { %v413_v58 = vpop.eup %412  ;;  %438 = vrcp.f32 %v191_v55  ;;  %v193_v59 = vadd.f32 1.0, %v411_v56  ;;  %v83_v55 = vmul.f32 %v602_v0, %v688_v41  ;;  %v701_v56 = vld [vmem:[#allocation3 + $0xc8] sm:$0xff] }
  0x28   :  { %v415_v60 = vpop.eup %414  ;;  %440 = vrcp.f32 %v192_v57  ;;  %v194_v61 = vadd.f32 1.0, %v413_v58 }
  0x29   :  { %v417_v62 = vpop.eup %416  ;;  %442 = vrcp.f32 %v193_v59  ;;  %v195_v63 = vadd.f32 1.0, %v415_v60  ;;  %v385_v59 = vmul.f32 -1.442695, %v80_v40  ;;  %v84_v60 = vmul.f32 %v602_v0, %v692_v46  ;;  %v731_v40 = vld [vmem:[#allocation3 + $0xf8] sm:$0xff] }
  0x2a   :  { %v419_v4 = vpop.eup %418  ;;  %444 = vrcp.f32 %v194_v61  ;;  %v196_v5 = vadd.f32 1.0, %v417_v62  ;;  %v706_v61 = vld [vmem:[#allocation3 + $0xd0] sm:$0xff] }
  0x2b   :  { %v421_v10 = vpop.eup %420  ;;  %446 = vrcp.f32 %v195_v63  ;;  %v197_v11 = vadd.f32 1.0, %v419_v4  ;;  %v386_v63 = vmul.f32 -1.442695, %v81_v45  ;;  %v85_v4 = vmul.f32 %v602_v0, %v696_v51 }
  0x2c   :  { %v423_v16 = vpop.eup %422  ;;  %448 = vrcp.f32 %v196_v5  ;;  %v198_v17 = vadd.f32 1.0, %v421_v10  ;;  %v711_v5 = vld [vmem:[#allocation3 + $0xd8] sm:$0xff]  ;;  %v87_v21 = vmul.f32 %v602_v0, %v706_v61  ;;  %v389_v28 = vmul.f32 -1.442695, %v84_v60 }
  0x2d   :  { %v425_v19 = vpop.eup %424  ;;  %450 = vrcp.f32 %v197_v11  ;;  %v199_v20 = vadd.f32 1.0, %v423_v16  ;;  %v387_v11 = vmul.f32 -1.442695, %v82_v50  ;;  %v86_v16 = vmul.f32 %v602_v0, %v701_v56 }
  0x2e   :  { %v427_v23 = vpop.eup %426  ;;  %452 = vrcp.f32 %v198_v17  ;;  %v200_v27 = vadd.f32 1.0, %v425_v19  ;;  %v716_v17 = vld [vmem:[#allocation3 + $0xe0] sm:$0xff] }
  0x2f   :  { %v429_v31 = vpop.eup %428  ;;  %454 = vrcp.f32 %v199_v20  ;;  %v201_v33 = vadd.f32 1.0, %v427_v23  ;;  %v388_v20 = vmul.f32 -1.442695, %v83_v55  ;;  %v721_v23 = vld [vmem:[#allocation3 + $0xe8] sm:$0xff] }
  0x30   :  { %v431_v37 = vpop.eup %430  ;;  %456 = vrcp.f32 %v200_v27  ;;  %v202_v39 = vadd.f32 1.0, %v429_v31  ;;  %v88_v31 = vmul.f32 %v602_v0, %v711_v5 }
  0x31   :  { %v433_v42 = vpop.eup %432  ;;  %458 = vrcp.f32 %v201_v33  ;;  %v203_v43 = vadd.f32 1.0, %v431_v37  ;;  %v726_v33 = vld [vmem:[#allocation3 + $0xf0] sm:$0xff]  ;;  %v390_v37 = vmul.f32 -1.442695, %v85_v4 }
  0x32   :  { %v435_v47 = vpop.eup %434  ;;  %460 = vrcp.f32 %v202_v39  ;;  %v204_v48 = vadd.f32 1.0, %v433_v42  ;;  %v89_v39 = vmul.f32 %v602_v0, %v716_v17 }
  0x33   :  { %v437_v52 = vpop.eup %436  ;;  %v285_v53 = vmul.f32 %v435_v47, %v604_v1  ;;  %462 = vrcp.f32 %v203_v43  ;;  %v391_v43 = vmul.f32 -1.442695, %v86_v16  ;;  %v392_v47 = vmul.f32 -1.442695, %v87_v21 }
  0x34   :  { %v439_v57 = vpop.eup %438  ;;  %v286_v58 = vmul.f32 %v437_v52, %v606_v2  ;;  %464 = vrcp.f32 %v204_v48  ;;  %v91_v48 = vmul.f32 %v602_v0, %v726_v33  ;;  %v92_v52 = vmul.f32 %v602_v0, %v731_v40 }
  0x35   :  { %v441_v62 = vpop.eup %440  ;;  %317 = vst [vmem:[#allocation6] sm:$0xff] %v285_v53  ;;  %v287_v1 = vmul.f32 %v439_v57, %v608_v3  ;;  %466 = vpow2.f32 %v382_v44  ;;  %v90_v44 = vmul.f32 %v602_v0, %v721_v23 }
  0x36   :  { %v443_v10 = vpop.eup %442  ;;  %318 = vst [vmem:[#allocation6 + $0x8] sm:$0xff] %v286_v58  ;;  %v288_v2 = vmul.f32 %v441_v62, %v616_v7  ;;  %468 = vpow2.f32 %v383_v49  ;;  %v396_v60 = vmul.f32 -1.442695, %v91_v48 }
  0x37   :  { %v445_v19 = vpop.eup %444  ;;  %319 = vst [vmem:[#allocation6 + $0x10] sm:$0xff] %v287_v1  ;;  %v289_v3 = vmul.f32 %v443_v10, %v618_v8  ;;  %470 = vpow2.f32 %v384_v54  ;;  %v395_v58 = vmul.f32 -1.442695, %v90_v44 }
  0x38   :  { %v447_v27 = vpop.eup %446  ;;  %320 = vst [vmem:[#allocation6 + $0x18] sm:$0xff] %v288_v2  ;;  %v290_v7 = vmul.f32 %v445_v19, %v620_v9  ;;  %472 = vpow2.f32 %v385_v59 }
  0x39   :  { %v449_v34 = vpop.eup %448  ;;  %321 = vst [vmem:[#allocation6 + $0x20] sm:$0xff] %v289_v3  ;;  %v291_v8 = vmul.f32 %v447_v27, %v628_v13  ;;  %474 = vpow2.f32 %v386_v63 }
  0x3a   :  { %v451_v42 = vpop.eup %450  ;;  %322 = vst [vmem:[#allocation6 + $0x28] sm:$0xff] %v290_v7  ;;  %v292_v9 = vmul.f32 %v449_v34, %v630_v14  ;;  %476 = vpow2.f32 %v387_v11  ;;  %v393_v14 = vmul.f32 -1.442695, %v88_v31 }
  0x3b   :  { %v453_v45 = vpop.eup %452  ;;  %323 = vst [vmem:[#allocation6 + $0x30] sm:$0xff] %v291_v8  ;;  %v293_v13 = vmul.f32 %v451_v42, %v632_v15  ;;  %478 = vpow2.f32 %v388_v20  ;;  %v394_v15 = vmul.f32 -1.442695, %v89_v39 }
  0x3c   :  { %v455_v49 = vpop.eup %454  ;;  %324 = vst [vmem:[#allocation6 + $0x38] sm:$0xff] %v292_v9  ;;  %v294_v50 = vmul.f32 %v453_v45, %v640_v24  ;;  %480 = vpow2.f32 %v389_v28 }
  0x3d   :  { %v457_v53 = vpop.eup %456  ;;  %325 = vst [vmem:[#allocation6 + $0x40] sm:$0xff] %v293_v13  ;;  %v295_v54 = vmul.f32 %v455_v49, %v642_v25  ;;  %482 = vpow2.f32 %v390_v37  ;;  %v397_v25 = vmul.f32 -1.442695, %v92_v52 }
  0x3e   :  { %v459_v55 = vpop.eup %458  ;;  %326 = vst [vmem:[#allocation6 + $0x48] sm:$0xff] %v294_v50  ;;  %v296_v57 = vmul.f32 %v457_v53, %v644_v26  ;;  %484 = vpow2.f32 %v391_v43 }
  0x3f   :  { %v461_v59 = vpop.eup %460  ;;  %327 = vst [vmem:[#allocation6 + $0x50] sm:$0xff] %v295_v54  ;;  %v297_v24 = vmul.f32 %v459_v55, %v648_v29  ;;  %486 = vpow2.f32 %v392_v47 }
  0x40   :  { %v463_v62 = vpop.eup %462  ;;  %328 = vst [vmem:[#allocation6 + $0x58] sm:$0xff] %v296_v57  ;;  %v298_v0 = vmul.f32 %v461_v59, %v652_v32  ;;  %488 = vpow2.f32 %v393_v14 }
  0x41   :  { %v465_v1 = vpop.eup %464  ;;  %329 = vst [vmem:[#allocation6 + $0x60] sm:$0xff] %v297_v24  ;;  %v299_v63 = vmul.f32 %v463_v62, %v656_v35  ;;  %490 = vpow2.f32 %v394_v15 }
  0x42   :  { %v467_v26 = vpop.eup %466  ;;  %330 = vst [vmem:[#allocation6 + $0x68] sm:$0xff] %v298_v0  ;;  %v300_v4 = vmul.f32 %v465_v1, %v660_v38  ;;  %492 = vpow2.f32 %v395_v58 }
  0x43   :  { %v469_v10 = vpop.eup %468  ;;  %331 = vst [vmem:[#allocation6 + $0x70] sm:$0xff] %v299_v63  ;;  %v205_v29 = vadd.f32 1.0, %v467_v26  ;;  %494 = vpow2.f32 %v396_v60 }
  0x44   :  { %v471_v2 = vpop.eup %470  ;;  %332 = vst [vmem:[#allocation6 + $0x78] sm:$0xff] %v300_v4  ;;  %v206_v11 = vadd.f32 1.0, %v469_v10  ;;  %496 = vpow2.f32 %v397_v25 }
  0x45   :  { %v473_v32 = vpop.eup %472  ;;  %498 = vrcp.f32 %v205_v29  ;;  %v207_v16 = vadd.f32 1.0, %v471_v2 }
  0x46   :  { %v475_v19 = vpop.eup %474  ;;  %500 = vrcp.f32 %v206_v11  ;;  %v208_v35 = vadd.f32 1.0, %v473_v32 }
  0x47   :  { %v477_v3 = vpop.eup %476  ;;  %502 = vrcp.f32 %v207_v16  ;;  %v209_v20 = vadd.f32 1.0, %v475_v19 }
  0x48   :  { %v479_v21 = vpop.eup %478  ;;  %504 = vrcp.f32 %v208_v35  ;;  %v210_v38 = vadd.f32 1.0, %v477_v3 }
  0x49   :  { %v481_v27 = vpop.eup %480  ;;  %506 = vrcp.f32 %v209_v20  ;;  %v211_v7 = vadd.f32 1.0, %v479_v21 }
  0x4a   :  { %v483_v28 = vpop.eup %482  ;;  %508 = vrcp.f32 %v210_v38  ;;  %v212_v31 = vadd.f32 1.0, %v481_v27 }
  0x4b   :  { %v485_v34 = vpop.eup %484  ;;  %510 = vrcp.f32 %v211_v7  ;;  %v213_v8 = vadd.f32 1.0, %v483_v28 }
  0x4c   :  { %v487_v37 = vpop.eup %486  ;;  %512 = vrcp.f32 %v212_v31  ;;  %v214_v39 = vadd.f32 1.0, %v485_v34 }
  0x4d   :  { %v489_v42 = vpop.eup %488  ;;  %514 = vrcp.f32 %v213_v8  ;;  %v215_v9 = vadd.f32 1.0, %v487_v37 }
  0x4e   :  { %v491_v43 = vpop.eup %490  ;;  %516 = vrcp.f32 %v214_v39  ;;  %v216_v44 = vadd.f32 1.0, %v489_v42 }
  0x4f   :  { %v493_v45 = vpop.eup %492  ;;  %518 = vrcp.f32 %v215_v9  ;;  %v217_v13 = vadd.f32 1.0, %v491_v43 }
  0x50   :  { %v495_v47 = vpop.eup %494  ;;  %520 = vrcp.f32 %v216_v44  ;;  %v218_v48 = vadd.f32 1.0, %v493_v45 }
  0x51   :  { %v497_v49 = vpop.eup %496  ;;  %522 = vrcp.f32 %v217_v13  ;;  %v219_v50 = vadd.f32 1.0, %v495_v47 }
  0x52   :  { %v499_v14 = vpop.eup %498  ;;  %524 = vrcp.f32 %v218_v48  ;;  %v220_v52 = vadd.f32 1.0, %v497_v49 }
  0x53   :  { %v501_v53 = vpop.eup %500  ;;  %v301_v54 = vmul.f32 %v499_v14, %v668_v6  ;;  %526 = vrcp.f32 %v219_v50 }
  0x54   :  { %v503_v15 = vpop.eup %502  ;;  %v302_v55 = vmul.f32 %v501_v53, %v670_v12  ;;  %528 = vrcp.f32 %v220_v52 }
  0x55   :  { %v505_v57 = vpop.eup %504  ;;  %333 = vst [vmem:[#allocation6 + $0x80] sm:$0xff] %v301_v54  ;;  %v303_v58 = vmul.f32 %v503_v15, %v672_v18 }
  0x56   :  { %v507_v59 = vpop.eup %506  ;;  %334 = vst [vmem:[#allocation6 + $0x88] sm:$0xff] %v302_v55  ;;  %v304_v24 = vmul.f32 %v505_v57, %v676_v22 }
  0x57   :  { %v509_v60 = vpop.eup %508  ;;  %335 = vst [vmem:[#allocation6 + $0x90] sm:$0xff] %v303_v58  ;;  %v305_v62 = vmul.f32 %v507_v59, %v680_v30 }
  0x58   :  { %v511_v0 = vpop.eup %510  ;;  %336 = vst [vmem:[#allocation6 + $0x98] sm:$0xff] %v304_v24  ;;  %v306_v6 = vmul.f32 %v509_v60, %v684_v36 }
  0x59   :  { %v513_v25 = vpop.eup %512  ;;  %337 = vst [vmem:[#allocation6 + $0xa0] sm:$0xff] %v305_v62  ;;  %v307_v12 = vmul.f32 %v511_v0, %v688_v41 }
  0x5a   :  { %v515_v1 = vpop.eup %514  ;;  %338 = vst [vmem:[#allocation6 + $0xa8] sm:$0xff] %v306_v6  ;;  %v308_v18 = vmul.f32 %v513_v25, %v692_v46 }
  0x5b   :  { %v517_v63 = vpop.eup %516  ;;  %339 = vst [vmem:[#allocation6 + $0xb0] sm:$0xff] %v307_v12  ;;  %v309_v22 = vmul.f32 %v515_v1, %v696_v51 }
  0x5c   :  { %v519_v26 = vpop.eup %518  ;;  %340 = vst [vmem:[#allocation6 + $0xb8] sm:$0xff] %v308_v18  ;;  %v310_v30 = vmul.f32 %v517_v63, %v701_v56 }
  0x5d   :  { %v521_v4 = vpop.eup %520  ;;  %341 = vst [vmem:[#allocation6 + $0xc0] sm:$0xff] %v309_v22  ;;  %v311_v36 = vmul.f32 %v519_v26, %v706_v61 }
  0x5e   :  { %v523_v10 = vpop.eup %522  ;;  %342 = vst [vmem:[#allocation6 + $0xc8] sm:$0xff] %v310_v30  ;;  %v312_v41 = vmul.f32 %v521_v4, %v711_v5 }
  0x5f   :  { %v525_v29 = vpop.eup %524  ;;  %343 = vst [vmem:[#allocation6 + $0xd0] sm:$0xff] %v311_v36  ;;  %v313_v46 = vmul.f32 %v523_v10, %v716_v17 }
  0x60   :  { %v527_v2 = vpop.eup %526  ;;  %344 = vst [vmem:[#allocation6 + $0xd8] sm:$0xff] %v312_v41  ;;  %v314_v51 = vmul.f32 %v525_v29, %v721_v23 }
  0x61   :  { %v529_v11 = vpop.eup %528  ;;  %345 = vst [vmem:[#allocation6 + $0xe0] sm:$0xff] %v313_v46  ;;  %v315_v56 = vmul.f32 %v527_v2, %v726_v33 }
  0x62   :  { %346 = vst [vmem:[#allocation6 + $0xe8] sm:$0xff] %v314_v51  ;;  %v316_v32 = vmul.f32 %v529_v11, %v731_v40 }
  0x63   :  { %347 = vst [vmem:[#allocation6 + $0xf0] sm:$0xff] %v315_v56 }
  0x64   :  { %348 = vst [vmem:[#allocation6 + $0xf8] sm:$0xff] %v316_v32 }
  0x65   :  { %353 = vsyncadd [#allocation5], 3840  ;;  %s577_s0 = smov [#allocation6]  }
  0x66   :  { %s354_s1 = sshll.u32 %s577_s0, 4  ;;  %s355_s1 = int_to_ptr.vmem [resolvable:$true] %s354_s1 }
  0x67   :  { %s550_s19 = scalar_lea.vmem %s355_s1, 256  ;;  %s554_s20 = scalar_lea.vmem %s355_s1, 4096 }
  0x68   :  { %p551_p5 = scmp.ne.s32.totalorder %s355_s1, %s550_s19  ;;  %p555_p6 = scmp.lt.s32.totalorder %s355_s1, %s355_s1 }
  0x69   :  { %p556_p7 = scmp.lt.s32.totalorder %s554_s20, %s550_s19 }
  0x6b   :  { %p557_p8 = por %p556_p7, %p555_p6 }
  0x6d   :  { %p558_p9 = pnand %p557_p8, %p551_p5 }
  0x6f   :  { %561 = shalt.err (!%p558_p9)
}
  0x70   :  { %360 = dma.vmem_to_hbm [thread:$0]  %s355_s1, 256, %s772_s2, [#allocation5], %s575_s13, %s575_s13, %s576_s14  }
  0x71   :  { %572 = dma.done.wait [#allocation5], 4096  }
  0x72   :  { %573 = vsyncadd [#allocation5], 4294963200 }
  0x73   :  { %364 = vsyncpa [#allocation4], 1 }
  0x74   :  { %365 = vsyncpa [#allocation5], 1 }

</bundles_post_ra>
